<compile_context>
chip_gen: v6e
topology: v6e:2x2x1
jax: 0.10.0
libtpu: 0.0.40
codegen_flags: <defaults>
</compile_context>

<pallas_src>
import functools

import jax
import jax.numpy as jnp
from jax import lax
from jax.experimental import pallas as pl
from jax.experimental.pallas import tpu as pltpu

H = 128            # hidden width fixed by the module (self.lin -> 128)
FUSE_MAX_N = 512   # single fused kernel for graphs up to this many nodes


def _round_up(x, m):
    return ((x + m - 1) // m) * m


def _cdiv(a, b):
    return (a + b - 1) // b


def _vmem_capacity_bytes():
    try:
        return int(pltpu.get_tpu_info().vmem_capacity_bytes)
    except Exception:
        return 64 * 1024 * 1024   # conservative (v7x-sized) fallback


# ---------------- fused path (small graphs, single launch, f32) ----------------

def _fused_kernel(emb_ref, sim_ref, w_ref, blin_ref, bias_ref, alpha_ref, out_ref):
    feat = jnp.dot(emb_ref[...], w_ref[...],
                   preferred_element_type=jnp.float32) + blin_ref[...]
    s = sim_ref[...].astype(jnp.float32)
    o = jnp.dot(s, feat, preferred_element_type=jnp.float32) + bias_ref[...]
    out_ref[...] = jnp.where(o > 0.0, o, alpha_ref[...] * o)


# ---------------- stage 1: feat = emb @ W_comb + b_lin (bf16 out) --------------

def _feat_kernel(emb_ref, w_ref, blin_ref, out_ref):
    h = jnp.dot(emb_ref[...], w_ref[...], preferred_element_type=jnp.float32)
    out_ref[...] = (h + blin_ref[...]).astype(out_ref.dtype)


# ---------------- stage 2: out = PReLU(sim @ feat + bias), K-tiled -------------

def _agg_kernel(sim_ref, feat_ref, bias_ref, alpha_ref, out_ref, *,
                n_cols, tile_k, feat_resident, mask_cols):
    k = pl.program_id(1)
    nk = pl.num_programs(1)

    @pl.when(k == 0)
    def _init():
        out_ref[...] = jnp.zeros_like(out_ref)

    s = sim_ref[...]
    if mask_cols:
        # Edge K tiles read past the last valid column of `sim`; the padded
        # region of the VMEM block is undefined, so zero it before the matmul.
        col = k * tile_k + lax.broadcasted_iota(jnp.int32, (1, tile_k), 1)
        s = jnp.where(col < n_cols, s, 0.0)
    s = s.astype(jnp.bfloat16)                 # in-kernel cast, hidden under DMA

    f = feat_ref[k] if feat_resident else feat_ref[...]
    out_ref[...] += jnp.dot(s, f, preferred_element_type=jnp.float32)

    @pl.when(k == nk - 1)
    def _finalize():
        o = out_ref[...] + bias_ref[...]
        out_ref[...] = jnp.where(o > 0.0, o, alpha_ref[...] * o)


# ---------------------------------- wrapper ------------------------------------

def gcn_sim_forward(emb, sim, w_fc, w_lin, b_lin, bias, prelu_a,
                    *, tile_m=None, tile_k=None):
    """Forward of MMGCN's GCN_sim.

    emb:   [N, Cin]  node features
    sim:   [N, N]    similarity matrix (f32 or bf16; streamed as-is)
    w_fc:  [Cout, Cin]  torch Linear weight layout (bias=False)
    w_lin: [128, Cout]  (module requires Cout == Cin to be well formed)
    b_lin: [128], bias: [128] or None, prelu_a: scalar PReLU slope.
    """
    N, Cin = emb.shape
    assert sim.shape == (N, N)
    if bias is None:
        bias = jnp.zeros((H,), jnp.float32)

    # Fold the two linears into one [Cin, H] weight (both are plain matmuls).
    w_comb = jnp.dot(w_fc.T.astype(jnp.float32), w_lin.T.astype(jnp.float32),
                     precision=lax.Precision.HIGHEST)
    blin2 = b_lin.reshape(1, H).astype(jnp.float32)
    bias2 = bias.reshape(1, H).astype(jnp.float32)
    alpha2 = jnp.asarray(prelu_a, jnp.float32).reshape(1, 1)
    emb_f = emb.astype(jnp.float32)

    # ---------------- small graphs: one fused kernel, all f32 ------------------
    if N <= FUSE_MAX_N and tile_m is None and tile_k is None:
        return pl.pallas_call(
            _fused_kernel,
            out_shape=jax.ShapeDtypeStruct((N, H), jnp.float32),
        )(emb_f, sim, w_comb, blin2, bias2, alpha2)

    # ---------------- large graphs: two-stage tiled pipeline -------------------
    vmem_cap = _vmem_capacity_bytes()
    if tile_m is None or tile_k is None:
        n_al = _round_up(N, 256)
        if vmem_cap <= 80 * 1024 * 1024:   # v7x-class: 64 MiB VMEM, ~3.2 TB/s HBM
            tm_pref, tk_pref = 512, 2048
        else:                              # v5e / v6e: 128 MiB VMEM
            tm_pref, tk_pref = 512, 1024
        tile_m = tile_m or min(tm_pref, n_al)
        tile_k = tile_k or min(tk_pref, n_al)
    assert tile_m % 8 == 0 and tile_k % 128 == 0
    num_m = _cdiv(N, tile_m)
    num_k = _cdiv(N, tile_k)
    n_feat = num_k * tile_k                # feat rows consumed by stage 2

    # Stage 1: row-tiled feature transform.  emb is padded so the extra feat
    # rows are finite (= b_lin); they never contribute because the matching
    # sim columns are explicitly zero-masked in stage 2.
    emb_p = jnp.pad(emb_f, ((0, n_feat - N), (0, 0)))
    tm1 = 256 if n_feat % 256 == 0 else 128
    feat = pl.pallas_call(
        _feat_kernel,
        out_shape=jax.ShapeDtypeStruct((n_feat, H), jnp.bfloat16),
        grid=(n_feat // tm1,),
        in_specs=[
            pl.BlockSpec((tm1, Cin), lambda i: (i, 0)),
            pl.BlockSpec((Cin, H), lambda i: (0, 0)),
            pl.BlockSpec((1, H), lambda i: (0, 0)),
        ],
        out_specs=pl.BlockSpec((tm1, H), lambda i: (i, 0)),
        compiler_params=pltpu.CompilerParams(
            dimension_semantics=("parallel",)),
    )(emb_p, w_comb, blin2)

    # feat stays VMEM-resident across the whole grid when it fits in a quarter
    # of VMEM; otherwise it is streamed per K tile (re-read num_m times, i.e.
    # ~ H*2/(tile_m*sim_itemsize) extra HBM traffic relative to sim).
    feat_bytes = n_feat * H * 2
    feat_resident = feat_bytes <= max(4 * 1024 * 1024, vmem_cap // 4)
    if feat_resident:
        feat_in = feat.reshape(num_k, tile_k, H)
        if feat_bytes > 2 * 1024 * 1024:
            # Constant block index -> DMA'd exactly once; single-buffer it so
            # default double-buffering doesn't waste VMEM needed by sim tiles.
            feat_spec = pl.BlockSpec((num_k, tile_k, H), lambda i, k: (0, 0, 0),
                                     pipeline_mode=pl.Buffered(1))
        else:
            feat_spec = pl.BlockSpec((num_k, tile_k, H), lambda i, k: (0, 0, 0))
    else:
        feat_in = feat
        feat_spec = pl.BlockSpec((tile_k, H), lambda i, k: (k, 0))

    kernel = functools.partial(
        _agg_kernel, n_cols=N, tile_k=tile_k,
        feat_resident=feat_resident, mask_cols=(N % tile_k) != 0)

    sim_itemsize = jnp.dtype(sim.dtype).itemsize
    out = pl.pallas_call(
        kernel,
        out_shape=jax.ShapeDtypeStruct((N, H), jnp.float32),
        grid=(num_m, num_k),                     # reduction axis last
        in_specs=[
            pl.BlockSpec((tile_m, tile_k), lambda i, k: (i, k)),
            feat_spec,
            pl.BlockSpec((1, H), lambda i, k: (0, 0)),
            pl.BlockSpec((1, 1), lambda i, k: (0, 0)),
        ],
        out_specs=pl.BlockSpec((tile_m, H), lambda i, k: (i, 0)),
        compiler_params=pltpu.CompilerParams(
            dimension_semantics=("parallel", "arbitrary"),
            vmem_limit_bytes=int(0.75 * vmem_cap)),
        cost_estimate=pl.CostEstimate(
            flops=2 * N * N * H,
            transcendentals=0,
            bytes_accessed=N * N * sim_itemsize + n_feat * H * 2 + N * H * 4),
    )(sim, feat_in, bias2, alpha2)
    return out


# ----------------------------------- test --------------------------------------

def _reference_forward(emb, sim, w_fc, w_lin, b_lin, bias, prelu_a):
    hp = lax.Precision.HIGHEST
    feat = jnp.dot(emb, w_fc.T, precision=hp)
    feat = jnp.dot(feat, w_lin.T, precision=hp) + b_lin
    out = jnp.dot(sim, feat, precision=hp) + bias
    return jnp.where(out > 0, out, prelu_a * out)


def _xavier_normal(key, shape, gain=1.414):
    fan_out, fan_in = shape   # torch Linear weight is [out_features, in_features]
    std = gain * (2.0 / (fan_in + fan_out)) ** 0.5
    return std * jax.random.normal(key, shape, dtype=jnp.float32)


def _check(name, out, ref, rel_tol):
    assert out.shape == ref.shape, (name, out.shape, ref.shape)
    scale = float(jnp.max(jnp.abs(ref)))
    err = float(jnp.max(jnp.abs(out - ref)))
    assert err <= rel_tol * max(scale, 1.0), (name, err, scale)


if __name__ == "__main__":
    key = jax.random.PRNGKey(0)
    k_fc, k_lin, k_bl, k_b, k_e1, k_s1, k_e2, k_s2 = jax.random.split(key, 8)

    C_IN = 32                                     # in_channels (== out_channels)
    w_fc = _xavier_normal(k_fc, (C_IN, C_IN))     # fc.weight  [out, in]
    w_lin = _xavier_normal(k_lin, (H, C_IN))      # lin.weight [128, in]
    # The module initializes these to 0; use non-zero values so the bias and
    # PReLU paths are actually exercised by the numerical check.
    b_lin = 0.1 * jax.random.normal(k_bl, (H,), jnp.float32)
    bias = 0.1 * jax.random.normal(k_b, (H,), jnp.float32)
    prelu_a = jnp.float32(0.25)                   # nn.PReLU default slope

    # --- test 1: small graph -> fused single-kernel path ----------------------
    N1 = 8
    emb1 = jax.random.normal(k_e1, (N1, C_IN), jnp.float32)
    sim1 = jax.random.normal(k_s1, (N1, N1), jnp.float32)
    out1 = jax.block_until_ready(
        gcn_sim_forward(emb1, sim1, w_fc, w_lin, b_lin, bias, prelu_a))
    ref1 = _reference_forward(emb1, sim1, w_fc, w_lin, b_lin, bias, prelu_a)
    _check("fused", out1, ref1, 1e-2)

    # --- test 2: larger graph -> tiled two-stage path (small forced tiles so the
    #     K accumulation, edge-column masking and partial output blocks are all
    #     exercised at a modest size; default tiles are generation-aware) -------
    N2 = 600
    emb2 = jax.random.normal(k_e2, (N2, C_IN), jnp.float32)
    sim2 = jax.random.normal(k_s2, (N2, N2), jnp.float32)
    out2 = jax.block_until_ready(
        gcn_sim_forward(emb2, sim2, w_fc, w_lin, b_lin, bias, prelu_a,
                        tile_m=256, tile_k=256))
    ref2 = _reference_forward(emb2, sim2, w_fc, w_lin, b_lin, bias, prelu_a)
    _check("tiled", out2, ref2, 2e-2)

    print("KERNEL_OK")
</pallas_src>

<mosaic_0001>
module attributes {stable_mosaic.version = 11 : i64} {
  func.func @_fused_kernel(%arg0: memref<8x32xf32, #tpu.memory_space<vmem>>, %arg1: memref<8x8xf32, #tpu.memory_space<vmem>>, %arg2: memref<32x128xf32, #tpu.memory_space<vmem>>, %arg3: memref<1x128xf32, #tpu.memory_space<vmem>>, %arg4: memref<1x128xf32, #tpu.memory_space<vmem>>, %arg5: memref<1x1xf32, #tpu.memory_space<vmem>>, %arg6: memref<8x128xf32, #tpu.memory_space<vmem>>) attributes {dimension_semantics = [], scalar_prefetch = 0 : i64, scratch_operands = 0 : i64, tpu.core_type = #tpu.core_type<tc>} {
    %c0 = arith.constant 0 : index
    %c0_0 = arith.constant 0 : index
    %0 = vector.load %arg0[%c0, %c0_0] : memref<8x32xf32, #tpu.memory_space<vmem>>, vector<8x32xf32>
    %c0_1 = arith.constant 0 : index
    %c0_2 = arith.constant 0 : index
    %1 = vector.load %arg2[%c0_1, %c0_2] : memref<32x128xf32, #tpu.memory_space<vmem>>, vector<32x128xf32>
    %cst = arith.constant dense<0.000000e+00> : vector<8x128xf32>
    %2 = tpu.matmul %0, %1, %cst {dimension_numbers = #tpu.dot_dimension_numbers<[1], [0], [0], [1], [0, 0, 1, 1], [], []>} : vector<8x32xf32>, vector<32x128xf32>, vector<8x128xf32> -> vector<8x128xf32>
    %c0_3 = arith.constant 0 : index
    %c0_4 = arith.constant 0 : index
    %3 = vector.load %arg3[%c0_3, %c0_4] : memref<1x128xf32, #tpu.memory_space<vmem>>, vector<1x128xf32>
    %4 = vector.broadcast %3 : vector<1x128xf32> to vector<8x128xf32>
    %5 = arith.addf %2, %4 : vector<8x128xf32>
    %c0_5 = arith.constant 0 : index
    %c0_6 = arith.constant 0 : index
    %6 = vector.load %arg1[%c0_5, %c0_6] : memref<8x8xf32, #tpu.memory_space<vmem>>, vector<8x8xf32>
    %cst_7 = arith.constant dense<0.000000e+00> : vector<8x128xf32>
    %7 = tpu.matmul %6, %5, %cst_7 {dimension_numbers = #tpu.dot_dimension_numbers<[1], [0], [0], [1], [0, 0, 1, 1], [], []>} : vector<8x8xf32>, vector<8x128xf32>, vector<8x128xf32> -> vector<8x128xf32>
    %c0_8 = arith.constant 0 : index
    %c0_9 = arith.constant 0 : index
    %8 = vector.load %arg4[%c0_8, %c0_9] : memref<1x128xf32, #tpu.memory_space<vmem>>, vector<1x128xf32>
    %9 = vector.broadcast %8 : vector<1x128xf32> to vector<8x128xf32>
    %10 = arith.addf %7, %9 : vector<8x128xf32>
    %cst_10 = arith.constant 0.000000e+00 : f32
    %11 = vector.broadcast %cst_10 : f32 to vector<8x128xf32>
    %12 = arith.cmpf ogt, %10, %11 : vector<8x128xf32>
    %c0_11 = arith.constant 0 : index
    %c0_12 = arith.constant 0 : index
    %13 = vector.load %arg5[%c0_11, %c0_12] : memref<1x1xf32, #tpu.memory_space<vmem>>, vector<1x1xf32>
    %14 = vector.broadcast %13 : vector<1x1xf32> to vector<8x128xf32>
    %15 = arith.mulf %14, %10 : vector<8x128xf32>
    %16 = arith.select %12, %10, %15 : vector<8x128xi1>, vector<8x128xf32>
    %c0_13 = arith.constant 0 : index
    %c0_14 = arith.constant 0 : index
    %17 = vector.load %arg6[%c0_13, %c0_14] : memref<8x128xf32, #tpu.memory_space<vmem>>, vector<8x128xf32>
    tpu.vector_store %arg6[%c0_13, %c0_14], %16 {strides = array<i32>} : memref<8x128xf32, #tpu.memory_space<vmem>>, vector<8x128xf32>,
    return
  }
}

</mosaic_0001>

<bundles_post_ra>
// kernel: tpu_custom_call.1
= control target key start
LH: loop header
LB: loop body
LE: loop exit
PB: predicated region body
PF: predicated region fallthrough
CT: control target
= control target key end

     0   :  { %s450_s0 = inlined_call_operand.hbm [shape: f32[8,32], index: 0, kind: input, shape index: {}]   ;;  %s451_s1 = inlined_call_operand.hbm [shape: f32[8,8], index: 1, kind: input, shape index: {}]   ;;  %s452_s2 = inlined_call_operand.hbm [shape: f32[32,128], index: 2, kind: input, shape index: {}]   ;;  %s453_s3 = inlined_call_operand.vmem [shape: f32[1,128], index: 3, kind: input, shape index: {}]   ;;  %s454_s4 = inlined_call_operand.vmem [shape: f32[1,128], index: 4, kind: input, shape index: {}]   ;;  %s455_s5 = inlined_call_operand.<no memory space> [shape: f32[1,1], index: 5, kind: input, shape index: {}]   ;;  %s456_s6 = inlined_call_operand.hbm [shape: f32[8,128], index: 6, kind: output, shape index: {}]  }
   0x1   :  { %v11_v0 = vstv %s455_s5 }
   0x2   :  { %12 = vst [vmem:[#allocation2] sm:$0x1] %v11_v0 }
   0x3   :  { %13 = vsyncpa [#allocation4], 0 }
   0x4   :  { %14 = vsyncpa [#allocation7], 0 }
   0x5   :  { %15 = vsyncpa [#allocation5], 0  ;;  %s385_s23 = smov [#allocation6]   ;;  %s386_s25 = smov [#allocation3]  }
   0x6   :  { %s32_s24 = sshll.u32 %s385_s23, 4  ;;  %s22_s26 = sshll.u32 %s386_s25, 4  ;;  %s33_s24 = int_to_ptr.vmem [resolvable:$true] %s32_s24  ;;  %s23_s26 = int_to_ptr.vmem [resolvable:$true] %s22_s26 }
   0x7   :  { %s307_s27 = scalar_lea.vmem %s33_s24, 128  ;;  %p312_p1 = scmp.lt.s32.totalorder %s33_s24, %s33_s24 }
   0x8   :  { %p308_p0 = scmp.ne.s32.totalorder %s33_s24, %s307_s27  ;;  %p313_p2 = scmp.lt.s32.totalorder %s307_s27, %s307_s27 }
   0xa   :  { %p314_p3 = por %p313_p2, %p312_p1 }
   0xc   :  { %p315_p4 = pnand %p314_p3, %p308_p0 }
   0xe   :  { %318 = shalt.err (!%p315_p4)
}
   0xf   :  { %35 = dma.hbm_to_vmem [thread:$0]  %s451_s1, 128, %s33_s24, [#allocation7]  }
  0x10   :  { %s327_s5 = scalar_lea.vmem %s23_s26, 128  ;;  %p332_p6 = scmp.lt.s32.totalorder %s23_s26, %s23_s26 }
  0x11   :  { %p328_p5 = scmp.ne.s32.totalorder %s23_s26, %s327_s5  ;;  %p333_p7 = scmp.lt.s32.totalorder %s327_s5, %s327_s5 }
  0x13   :  { %p334_p8 = por %p333_p7, %p332_p6 }
  0x15   :  { %p335_p9 = pnand %p334_p8, %p328_p5 }
  0x17   :  { %338 = shalt.err (!%p335_p9)
}
  0x18   :  { %25 = dma.hbm_to_vmem [thread:$0]  %s450_s0, 128, %s23_s26, [#allocation4]  }
  0x19   :  { %s387_s8 = smov [#allocation8]  }
  0x1a   :  { %s41_s9 = sshll.u32 %s387_s8, 4  ;;  %s42_s9 = int_to_ptr.vmem [resolvable:$true] %s41_s9 }
  0x1b   :  { %s347_s10 = scalar_lea.vmem %s42_s9, 512  ;;  %p352_p11 = scmp.lt.s32.totalorder %s42_s9, %s42_s9 }
  0x1c   :  { %p348_p10 = scmp.ne.s32.totalorder %s42_s9, %s347_s10  ;;  %p353_p12 = scmp.lt.s32.totalorder %s347_s10, %s347_s10 }
  0x1e   :  { %p354_p13 = por %p353_p12, %p352_p11 }
  0x20   :  { %p355_p0 = pnand %p354_p13, %p348_p10 }
  0x22   :  { %358 = shalt.err (!%p355_p0)
}
  0x23   :  { %s388_s1 = smov 128   ;;  %s389_s11 = smov 8  }
  0x24   :  { %47 = dma.hbm_to_vmem [thread:$0]  %s452_s2, 512, %s42_s9, [#allocation7], %s388_s1, %s388_s1, %s389_s11  }
  0x25   :  { %379 = dma.done.wait [#allocation4], 128  }
  0x26   :  { %380 = vsyncadd [#allocation4], 4294967168 }
  0x27   :  { %381 = dma.done.wait [#allocation7], 640  }
  0x28   :  { %382 = vsyncadd [#allocation7], 4294966656  ;;  %v390_v1 = vmov 0.0   ;;  %vm391_vm0 = vmmov 0   ;;  %v67_v2 = vld [vmem:[#allocation8 + $0x18] sm:$0xff]  ;;  %v66_v3 = vld [vmem:[#allocation8 + $0x10] sm:$0xff] }
  0x29   :  { %273 = vmatprep.subr.mxu0 %v390_v1  ;;  %281 = vmatprep.mubr.msk.f32.mxu0 %vm391_vm0, %v390_v1  ;;  %v65_v4 = vld [vmem:[#allocation8 + $0x8] sm:$0xff]  ;;  %v64_v5 = vld [vmem:[#allocation8] sm:$0xff]  ;;  %v63_v6 = vld [vmem:[#allocation3] sm:$0xff]  ;;  %vm75_vm1 = vcmask 261120   ;;  %v392_v8 = vmov 0   ;;  %vm157_vm2 = vcmask 64512  }
  0x2a   :  { %284 = vmatprep.subr.mxu1 %v390_v1  ;;  %286 = vmatprep.mubr.msk.f32.mxu1 %vm391_vm0, %v390_v1  ;;  %v265_v7 = vld [vmem:[#allocation2] ss:$0 sm:$0xff]  ;;  %v149_v12 = vld [vmem:[#allocation6] sm:$0xff]  ;;  %s393_s16 = smov [#allocation9]  }
  0x2b   :  { %274 = vmatpush3.msra.mxu0 %v67_v2  ;;  %298 = vset.pattern.permute.xlu0 %v392_v8  ;;  %v261_v9 = vld [vmem:[%s453_s3] ss:$0 sm:$0xff]  ;;  %s251_s17 = sshll.u32 %s393_s16, 4  ;;  %s252_s17 = int_to_ptr.vmem [resolvable:$true] %s251_s17 }
  0x2c   :  { %275 = vmatprep.subr.mxu0 %v390_v1  ;;  %239 = vperm.xlu0 %298, %v265_v7   ;;  %v263_v14 = vld [vmem:[%s454_s4] ss:$0 sm:$0xff]  ;;  %s359_s3 = scalar_lea.vmem %s252_s17, 128  ;;  %p364_p2 = scmp.lt.s32.totalorder %s252_s17, %s252_s17 }
  0x2d   :  { %276 = vmatpush3.msra.mxu0 %v66_v3  ;;  %p360_p1 = scmp.ne.s32.totalorder %s252_s17, %s359_s3  ;;  %p365_p3 = scmp.lt.s32.totalorder %s359_s3, %s359_s3 }
  0x2e   :  { %277 = vmatprep.subr.mxu0 %v390_v1 }
  0x2f   :  { %278 = vmatpush3.msra.mxu0 %v65_v4  ;;  %p366_p4 = por %p365_p3, %p364_p2 }
  0x30   :  { %279 = vmatprep.subr.mxu0 %v390_v1 }
  0x31   :  { %280 = vmatpush3.msra.mxu0 %v64_v5  ;;  %p367_p5 = pnand %p366_p4, %p360_p1 }
  0x32   :  { %282 = vmatmul.mubr.msk.f32.vlgmr.msra.gmra.mxu0 %vm75_vm1, %v63_v6 }
  0xa7   :  { %v240_v16 = vpop.permute.xlu0 %239 }
  0xf2   :  { %v145_v10 = vpop.f32.mrf.mxu0 }
  0xf3   :  { %v146_v11 = vadd.f32 %v261_v9, %v145_v10 }
  0xf4   :  { %v283_v13 = vpop.f32.mrf.mxu0 }
  0xf5   :  { %285 = vmatpush3.msra.mxu1 %v146_v11 }
  0xf6   :  { %287 = vmatmul.mubr.msk.f32.vlgmr.msra.gmra.mxu1 %vm157_vm2, %v149_v12 }
 0x1b6   :  { %v227_v15 = vpop.f32.mrf.mxu1 }
 0x1b7   :  { %v228_v17 = vadd.f32 %v263_v14, %v227_v15 }
 0x1b8   :  { %v288_v18 = vpop.f32.mrf.mxu1 }
 0x1b9   :  { %v242_v19 = vmul.f32 %v240_v16, %v228_v17  ;;  %vm231_vm3 = vcmp.gt.f32.partialorder %v228_v17, 0.0 }
 0x1bb   :  { %v243_v20 = vsel %vm231_vm3, %v228_v17, %v242_v19 }
 0x1bc   :  { %244 = vst [vmem:[#allocation9] sm:$0xff] %v243_v20 }
 0x1bd   :  { %370 = shalt.err (!%p367_p5)
}
 0x1be   :  { %254 = dma.vmem_to_hbm [thread:$0]  %s252_s17, 128, %s456_s6, [#allocation5]  }
 0x1bf   :  { %383 = dma.done.wait [#allocation5], 128  }
 0x1c0   :  { %384 = vsyncadd [#allocation5], 4294967168 }
 0x1c1   :  { %258 = vsyncpa [#allocation4], 1 }
 0x1c2   :  { %259 = vsyncpa [#allocation7], 1 }
 0x1c3   :  { %260 = vsyncpa [#allocation5], 1 }

</bundles_post_ra>
